<compile_context>
chip_gen: v7x
topology: tpu7x:2x2x1
jax: 0.10.0
libtpu: 0.0.40
codegen_flags: <defaults>
</compile_context>

<pallas_src>
import jax
import jax.numpy as jnp
from jax import lax
from jax.experimental import pallas as pl
from jax.experimental.pallas import tpu as pltpu


# ---------------------------------------------------------------------------
# Kernel 1: tiled pairwise squared L2 + multilabel agreement, triangle-masked
# ---------------------------------------------------------------------------
def _pairwise_kernel(fi_ref, fj_ref, mi_ref, mj_ref, d2_ref, agree_ref):
    tm, tn = d2_ref.shape
    n_class = mi_ref.shape[-1]

    i = pl.program_id(0)
    j = pl.program_id(1)

    # Strictly-lower-triangle tiles: no pair in this tile is valid, skip all
    # compute and just write sentinels (top_k / threshold logic ignores them).
    @pl.when(j < i)
    def _():
        d2_ref[...] = jnp.full((tm, tn), 1e30, jnp.float32)
        agree_ref[...] = jnp.full((tm, tn), -1e30, jnp.float32)

    @pl.when(j >= i)
    def _():
        fi = fi_ref[...].astype(jnp.float32)                 # (tm, dim)
        fj = fj_ref[...].astype(jnp.float32)                 # (tn, dim)

        # Row norms + Gram matmul in f32 (MXU, f32 accumulation). f32 keeps
        # the ||xi||^2 + ||xj||^2 - 2<xi,xj> cancellation well-conditioned.
        sqi = jnp.sum(fi * fi, axis=-1, keepdims=True)       # (tm, 1)
        sqj = jnp.sum(fj * fj, axis=-1, keepdims=True)       # (tn, 1)
        g = lax.dot_general(
            fi, fj,
            dimension_numbers=(((1,), (1,)), ((), ())),      # NT matmul
            preferred_element_type=jnp.float32,
        )                                                    # (tm, tn)
        d2 = jnp.maximum(sqi + sqj.T - 2.0 * g, 0.0)

        # Pairwise L1 of multilabels: hoist the transpose (one XLU op per
        # tile), then accumulate class-by-class in f32 on the VPU.
        # TODO(synk): for very large n_class, chunk this loop into 128-wide
        # class slabs with lax.fori_loop to bound vreg live ranges.
        mi = mi_ref[...].astype(jnp.float32)                 # (tm, n_class)
        mjT = mj_ref[...].astype(jnp.float32).T              # (n_class, tn)
        l1 = jnp.zeros((tm, tn), jnp.float32)
        for c in range(n_class):                             # n_class is static
            l1 = l1 + jnp.abs(mi[:, c:c + 1] - mjT[c:c + 1, :])
        agree = 1.0 - 0.5 * l1

        # In-kernel upper-triangle masking (replaces host condensed-index
        # gathers): invalid (diag + lower) -> +BIG distance / -BIG agreement.
        row_g = i * tm + lax.broadcasted_iota(jnp.int32, (tm, tn), 0)
        col_g = j * tn + lax.broadcasted_iota(jnp.int32, (tm, tn), 1)
        upper = col_g > row_g

        d2_ref[...] = jnp.where(upper, d2, 1e30)
        agree_ref[...] = jnp.where(upper, agree, -1e30)


def _pick_tile(n, cap=256):
    for t in (256, 128, 64, 32, 16, 8):
        if t <= cap and n % t == 0:
            return t
    return n  # fall back to a single full block


def pairwise_stats(features, multilabels):
    bs, dim = features.shape
    _, n_class = multilabels.shape
    tile = _pick_tile(bs)
    grid = (bs // tile, bs // tile)

    return pl.pallas_call(
        _pairwise_kernel,
        out_shape=(
            jax.ShapeDtypeStruct((bs, bs), jnp.float32),
            jax.ShapeDtypeStruct((bs, bs), jnp.float32),
        ),
        grid=grid,
        in_specs=[
            pl.BlockSpec((tile, dim), lambda i, j: (i, 0)),
            pl.BlockSpec((tile, dim), lambda i, j: (j, 0)),
            pl.BlockSpec((tile, n_class), lambda i, j: (i, 0)),
            pl.BlockSpec((tile, n_class), lambda i, j: (j, 0)),
        ],
        out_specs=(
            pl.BlockSpec((tile, tile), lambda i, j: (i, j)),
            pl.BlockSpec((tile, tile), lambda i, j: (i, j)),
        ),
        compiler_params=pltpu.CompilerParams(
            dimension_semantics=("parallel", "parallel")),
    )(features, features, multilabels, multilabels)


# ---------------------------------------------------------------------------
# Kernel 2: masked positive/negative exponential means + loss assembly
# (lane-dense (rows, 128) inputs; validity mask rebuilt from an SMEM count;
#  threshold scalar read from SMEM)
# ---------------------------------------------------------------------------
def _loss_kernel(thr_ref, nval_ref, sdist_ref, agree_ref, loss_ref):
    thr = thr_ref[0, 0]                                  # scalar from SMEM
    n_valid = nval_ref[0, 0]                             # mined-pair count (SMEM)
    rows, lanes = sdist_ref.shape

    sdist = sdist_ref[...]                               # (R, 128) f32
    agree = agree_ref[...]                               # (R, 128) f32

    flat_idx = (lax.broadcasted_iota(jnp.int32, (rows, lanes), 0) * lanes
                + lax.broadcasted_iota(jnp.int32, (rows, lanes), 1))
    valid = flat_idx < n_valid

    gt = agree > thr
    is_pos = jnp.logical_and(gt, valid)
    is_neg = jnp.logical_and(jnp.logical_not(gt), valid)
    e = jnp.exp(-sdist)                                  # EUP; pads masked below

    def rsum(x):  # lane reduce then sublane reduce -> (1, 1)
        return jnp.sum(jnp.sum(x, axis=1, keepdims=True), axis=0, keepdims=True)

    pos_cnt = rsum(jnp.where(is_pos, 1.0, 0.0))
    neg_cnt = rsum(jnp.where(is_neg, 1.0, 0.0))
    pos_sum = rsum(jnp.where(is_pos, e, 0.0))
    neg_sum = rsum(jnp.where(is_neg, e, 0.0))

    # torch fallbacks: no positive pairs -> pos_exponant = 1, num = 0
    #                  no negative pairs -> neg_exponant = 0.5
    pos_exp = jnp.where(pos_cnt > 0, pos_sum / jnp.maximum(pos_cnt, 1.0), 1.0)
    num = jnp.where(pos_cnt > 0, -jnp.log(pos_exp), 0.0)
    neg_exp = jnp.where(neg_cnt > 0, neg_sum / jnp.maximum(neg_cnt, 1.0), 0.5)

    loss_ref[...] = num + jnp.log(pos_exp + neg_exp)


def _loss_reduce(sdist_sel, agree_sel, n_valid, threshold):
    return pl.pallas_call(
        _loss_kernel,
        out_shape=jax.ShapeDtypeStruct((1, 1), jnp.float32),
        in_specs=[
            pl.BlockSpec(memory_space=pltpu.MemorySpace.SMEM),   # threshold (1,1)
            pl.BlockSpec(memory_space=pltpu.MemorySpace.SMEM),   # n_valid   (1,1)
            pl.BlockSpec(memory_space=pltpu.MemorySpace.VMEM),   # sdist  (R,128)
            pl.BlockSpec(memory_space=pltpu.MemorySpace.VMEM),   # agree  (R,128)
        ],
        out_specs=pl.BlockSpec(memory_space=pltpu.MemorySpace.VMEM),
    )(threshold, n_valid, sdist_sel, agree_sel)


# ---------------------------------------------------------------------------
# Wrapper reproducing DiscriminativeLoss.forward (functional threshold state)
# ---------------------------------------------------------------------------
def discriminative_loss(features, multilabels, threshold,
                        mining_ratio=0.001, moment=0.1):
    bs = features.shape[0]
    n_pairs = bs * (bs - 1) // 2

    d2m, agm = pairwise_stats(features.astype(jnp.float32),
                              multilabels.astype(jnp.float32))
    d2_flat = d2m.reshape(-1)    # invalid entries hold +1e30
    ag_flat = agm.reshape(-1)    # invalid entries hold -1e30

    # Functional version of _update_threshold: pos-th largest valid agreement
    # (torch's sorted[-0] == sorted[0] == min when pos == 0).
    pos = int(n_pairs * mining_ratio)
    k_t = pos if pos > 0 else n_pairs
    t = lax.top_k(ag_flat, k_t)[0][-1]
    new_threshold = threshold * (1.0 - moment) + t * moment

    n_similar = int(n_pairs * mining_ratio)
    if n_similar == 0:
        # no mined pairs: pos_exponant = 1, num = 0, neg_exponant = 0.5
        return jnp.log(jnp.float32(1.5)), new_threshold

    # TODO(synk): top_k pair mining (data-dependent global selection) has no
    # clean Pallas primitive; done with lax.top_k + a tiny gather in XLA.
    neg_vals, idx = lax.top_k(-d2_flat, n_similar)       # n_similar smallest dists
    sdist_sel = -neg_vals
    agree_sel = ag_flat[idx]

    # Pad the mined set to a lane-dense (rows, 128) layout; validity handled
    # in-kernel from the SMEM count, so pad values are don't-cares.
    kp = ((n_similar + 127) // 128) * 128
    pad = kp - n_similar
    sdist_p = jnp.concatenate(
        [sdist_sel, jnp.zeros((pad,), jnp.float32)]).reshape(kp // 128, 128)
    agree_p = jnp.concatenate(
        [agree_sel, jnp.zeros((pad,), jnp.float32)]).reshape(kp // 128, 128)

    thr = threshold.reshape(1, 1).astype(jnp.float32)    # OLD threshold (torch parity)
    n_valid = jnp.full((1, 1), n_similar, jnp.int32)
    loss = _loss_reduce(sdist_p, agree_p, n_valid, thr)[0, 0]
    return loss, new_threshold


if __name__ == "__main__":
    key = jax.random.PRNGKey(0)
    k1, k2 = jax.random.split(key)

    BS, DIM, N_CLASS = 32, 64, 16
    # scaled features keep exp(-sdist) in a well-conditioned range
    features = 0.1 * jax.random.normal(k1, (BS, DIM), jnp.float32)
    multilabels = jax.nn.softmax(
        jax.random.normal(k2, (BS, N_CLASS), jnp.float32), axis=-1)
    # deterministic init of the `threshold` buffer (shape (1,)), replacing init_threshold
    threshold = jnp.array([0.6], jnp.float32)

    loss, new_threshold = discriminative_loss(
        features, multilabels, threshold, mining_ratio=0.1, moment=0.1)
    jax.block_until_ready((loss, new_threshold))
    print("KERNEL_OK")
</pallas_src>

<mosaic_0001>
module attributes {stable_mosaic.version = 11 : i64} {
  func.func @_pairwise_kernel(%arg0: i32, %arg1: i32, %arg2: memref<32x64xf32, #tpu.memory_space<vmem>>, %arg3: memref<32x64xf32, #tpu.memory_space<vmem>>, %arg4: memref<32x16xf32, #tpu.memory_space<vmem>>, %arg5: memref<32x16xf32, #tpu.memory_space<vmem>>, %arg6: memref<32x32xf32, #tpu.memory_space<vmem>>, %arg7: memref<32x32xf32, #tpu.memory_space<vmem>>) attributes {dimension_semantics = [#tpu.dimension_semantics<parallel>, #tpu.dimension_semantics<parallel>], iteration_bounds = array<i64: 1, 1>, scalar_prefetch = 0 : i64, scratch_operands = 0 : i64, tpu.core_type = #tpu.core_type<tc>, window_params = [{transform_indices = @transform_0, window_bounds = array<i64: 32, 64>}, {transform_indices = @transform_1, window_bounds = array<i64: 32, 64>}, {transform_indices = @transform_2, window_bounds = array<i64: 32, 16>}, {transform_indices = @transform_3, window_bounds = array<i64: 32, 16>}, {transform_indices = @transform_4, window_bounds = array<i64: 32, 32>}, {transform_indices = @transform_5, window_bounds = array<i64: 32, 32>}]} {
    %0 = arith.cmpi slt, %arg1, %arg0 : i32
    %1 = arith.extui %0 : i1 to i32
    %c0_i32 = arith.constant 0 : i32
    %2 = arith.cmpi ne, %1, %c0_i32 : i32
    scf.if %2 {
      %cst = arith.constant 1.000000e+30 : f32
      %6 = vector.broadcast %cst : f32 to vector<32x32xf32>
      %c0 = arith.constant 0 : index
      %c0_1 = arith.constant 0 : index
      %7 = vector.load %arg6[%c0, %c0_1] : memref<32x32xf32, #tpu.memory_space<vmem>>, vector<32x32xf32>
      tpu.vector_store %arg6[%c0, %c0_1], %6 {strides = array<i32>} : memref<32x32xf32, #tpu.memory_space<vmem>>, vector<32x32xf32>,
      %cst_2 = arith.constant -1.000000e+30 : f32
      %8 = vector.broadcast %cst_2 : f32 to vector<32x32xf32>
      %c0_3 = arith.constant 0 : index
      %c0_4 = arith.constant 0 : index
      %9 = vector.load %arg7[%c0_3, %c0_4] : memref<32x32xf32, #tpu.memory_space<vmem>>, vector<32x32xf32>
      tpu.vector_store %arg7[%c0_3, %c0_4], %8 {strides = array<i32>} : memref<32x32xf32, #tpu.memory_space<vmem>>, vector<32x32xf32>,
    } else {
    }
    %3 = arith.cmpi sge, %arg1, %arg0 : i32
    %4 = arith.extui %3 : i1 to i32
    %c0_i32_0 = arith.constant 0 : i32
    %5 = arith.cmpi ne, %4, %c0_i32_0 : i32
    scf.if %5 {
      %c0 = arith.constant 0 : index
      %c0_1 = arith.constant 0 : index
      %6 = vector.load %arg2[%c0, %c0_1] : memref<32x64xf32, #tpu.memory_space<vmem>>, vector<32x64xf32>
      %c0_2 = arith.constant 0 : index
      %c0_3 = arith.constant 0 : index
      %7 = vector.load %arg3[%c0_2, %c0_3] : memref<32x64xf32, #tpu.memory_space<vmem>>, vector<32x64xf32>
      %8 = arith.mulf %6, %6 : vector<32x64xf32>
      %cst = arith.constant dense<0.000000e+00> : vector<32xf32>
      %9 = vector.multi_reduction <add>, %8, %cst [1] : vector<32x64xf32> to vector<32xf32>
      %10 = vector.shape_cast %9 : vector<32xf32> to vector<32x1xf32>
      %11 = arith.mulf %7, %7 : vector<32x64xf32>
      %cst_4 = arith.constant dense<0.000000e+00> : vector<32xf32>
      %12 = vector.multi_reduction <add>, %11, %cst_4 [1] : vector<32x64xf32> to vector<32xf32>
      %13 = vector.shape_cast %12 : vector<32xf32> to vector<32x1xf32>
      %cst_5 = arith.constant dense<0.000000e+00> : vector<32x32xf32>
      %14 = tpu.matmul %6, %7, %cst_5 {dimension_numbers = #tpu.dot_dimension_numbers<[1], [1], [0], [0], [0, 0, 1, 0], [], []>} : vector<32x64xf32>, vector<32x64xf32>, vector<32x32xf32> -> vector<32x32xf32>
      %15 = tpu.transpose %13, [1, 0] : vector<32x1xf32> -> vector<1x32xf32>
      %16 = vector.broadcast %10 : vector<32x1xf32> to vector<32x32xf32>
      %17 = vector.broadcast %15 : vector<1x32xf32> to vector<32x32xf32>
      %18 = arith.addf %16, %17 : vector<32x32xf32>
      %cst_6 = arith.constant 2.000000e+00 : f32
      %19 = vector.broadcast %cst_6 : f32 to vector<32x32xf32>
      %20 = arith.mulf %19, %14 : vector<32x32xf32>
      %21 = arith.subf %18, %20 : vector<32x32xf32>
      %cst_7 = arith.constant 0.000000e+00 : f32
      %22 = vector.broadcast %cst_7 : f32 to vector<32x32xf32>
      %23 = arith.maximumf %21, %22 : vector<32x32xf32>
      %c0_8 = arith.constant 0 : index
      %c0_9 = arith.constant 0 : index
      %24 = vector.load %arg4[%c0_8, %c0_9] : memref<32x16xf32, #tpu.memory_space<vmem>>, vector<32x16xf32>
      %c0_10 = arith.constant 0 : index
      %c0_11 = arith.constant 0 : index
      %25 = vector.load %arg5[%c0_10, %c0_11] : memref<32x16xf32, #tpu.memory_space<vmem>>, vector<32x16xf32>
      %26 = tpu.transpose %25, [1, 0] : vector<32x16xf32> -> vector<16x32xf32>
      %cst_12 = arith.constant 0.000000e+00 : f32
      %27 = vector.broadcast %cst_12 : f32 to vector<32x32xf32>
      %28 = vector.extract_strided_slice %24 {offsets = [0, 0], sizes = [32, 1], strides = [1, 1]} : vector<32x16xf32> to vector<32x1xf32>
      %29 = vector.extract_strided_slice %26 {offsets = [0, 0], sizes = [1, 32], strides = [1, 1]} : vector<16x32xf32> to vector<1x32xf32>
      %30 = vector.broadcast %28 : vector<32x1xf32> to vector<32x32xf32>
      %31 = vector.broadcast %29 : vector<1x32xf32> to vector<32x32xf32>
      %32 = arith.subf %30, %31 : vector<32x32xf32>
      %33 = math.absf %32 : vector<32x32xf32>
      %34 = arith.addf %27, %33 : vector<32x32xf32>
      %35 = vector.extract_strided_slice %24 {offsets = [0, 1], sizes = [32, 1], strides = [1, 1]} : vector<32x16xf32> to vector<32x1xf32>
      %36 = vector.extract_strided_slice %26 {offsets = [1, 0], sizes = [1, 32], strides = [1, 1]} : vector<16x32xf32> to vector<1x32xf32>
      %37 = vector.broadcast %35 : vector<32x1xf32> to vector<32x32xf32>
      %38 = vector.broadcast %36 : vector<1x32xf32> to vector<32x32xf32>
      %39 = arith.subf %37, %38 : vector<32x32xf32>
      %40 = math.absf %39 : vector<32x32xf32>
      %41 = arith.addf %34, %40 : vector<32x32xf32>
      %42 = vector.extract_strided_slice %24 {offsets = [0, 2], sizes = [32, 1], strides = [1, 1]} : vector<32x16xf32> to vector<32x1xf32>
      %43 = vector.extract_strided_slice %26 {offsets = [2, 0], sizes = [1, 32], strides = [1, 1]} : vector<16x32xf32> to vector<1x32xf32>
      %44 = vector.broadcast %42 : vector<32x1xf32> to vector<32x32xf32>
      %45 = vector.broadcast %43 : vector<1x32xf32> to vector<32x32xf32>
      %46 = arith.subf %44, %45 : vector<32x32xf32>
      %47 = math.absf %46 : vector<32x32xf32>
      %48 = arith.addf %41, %47 : vector<32x32xf32>
      %49 = vector.extract_strided_slice %24 {offsets = [0, 3], sizes = [32, 1], strides = [1, 1]} : vector<32x16xf32> to vector<32x1xf32>
      %50 = vector.extract_strided_slice %26 {offsets = [3, 0], sizes = [1, 32], strides = [1, 1]} : vector<16x32xf32> to vector<1x32xf32>
      %51 = vector.broadcast %49 : vector<32x1xf32> to vector<32x32xf32>
      %52 = vector.broadcast %50 : vector<1x32xf32> to vector<32x32xf32>
      %53 = arith.subf %51, %52 : vector<32x32xf32>
      %54 = math.absf %53 : vector<32x32xf32>
      %55 = arith.addf %48, %54 : vector<32x32xf32>
      %56 = vector.extract_strided_slice %24 {offsets = [0, 4], sizes = [32, 1], strides = [1, 1]} : vector<32x16xf32> to vector<32x1xf32>
      %57 = vector.extract_strided_slice %26 {offsets = [4, 0], sizes = [1, 32], strides = [1, 1]} : vector<16x32xf32> to vector<1x32xf32>
      %58 = vector.broadcast %56 : vector<32x1xf32> to vector<32x32xf32>
      %59 = vector.broadcast %57 : vector<1x32xf32> to vector<32x32xf32>
      %60 = arith.subf %58, %59 : vector<32x32xf32>
      %61 = math.absf %60 : vector<32x32xf32>
      %62 = arith.addf %55, %61 : vector<32x32xf32>
      %63 = vector.extract_strided_slice %24 {offsets = [0, 5], sizes = [32, 1], strides = [1, 1]} : vector<32x16xf32> to vector<32x1xf32>
      %64 = vector.extract_strided_slice %26 {offsets = [5, 0], sizes = [1, 32], strides = [1, 1]} : vector<16x32xf32> to vector<1x32xf32>
      %65 = vector.broadcast %63 : vector<32x1xf32> to vector<32x32xf32>
      %66 = vector.broadcast %64 : vector<1x32xf32> to vector<32x32xf32>
      %67 = arith.subf %65, %66 : vector<32x32xf32>
      %68 = math.absf %67 : vector<32x32xf32>
      %69 = arith.addf %62, %68 : vector<32x32xf32>
      %70 = vector.extract_strided_slice %24 {offsets = [0, 6], sizes = [32, 1], strides = [1, 1]} : vector<32x16xf32> to vector<32x1xf32>
      %71 = vector.extract_strided_slice %26 {offsets = [6, 0], sizes = [1, 32], strides = [1, 1]} : vector<16x32xf32> to vector<1x32xf32>
      %72 = vector.broadcast %70 : vector<32x1xf32> to vector<32x32xf32>
      %73 = vector.broadcast %71 : vector<1x32xf32> to vector<32x32xf32>
      %74 = arith.subf %72, %73 : vector<32x32xf32>
      %75 = math.absf %74 : vector<32x32xf32>
      %76 = arith.addf %69, %75 : vector<32x32xf32>
      %77 = vector.extract_strided_slice %24 {offsets = [0, 7], sizes = [32, 1], strides = [1, 1]} : vector<32x16xf32> to vector<32x1xf32>
      %78 = vector.extract_strided_slice %26 {offsets = [7, 0], sizes = [1, 32], strides = [1, 1]} : vector<16x32xf32> to vector<1x32xf32>
      %79 = vector.broadcast %77 : vector<32x1xf32> to vector<32x32xf32>
      %80 = vector.broadcast %78 : vector<1x32xf32> to vector<32x32xf32>
      %81 = arith.subf %79, %80 : vector<32x32xf32>
      %82 = math.absf %81 : vector<32x32xf32>
      %83 = arith.addf %76, %82 : vector<32x32xf32>
      %84 = vector.extract_strided_slice %24 {offsets = [0, 8], sizes = [32, 1], strides = [1, 1]} : vector<32x16xf32> to vector<32x1xf32>
      %85 = vector.extract_strided_slice %26 {offsets = [8, 0], sizes = [1, 32], strides = [1, 1]} : vector<16x32xf32> to vector<1x32xf32>
      %86 = vector.broadcast %84 : vector<32x1xf32> to vector<32x32xf32>
      %87 = vector.broadcast %85 : vector<1x32xf32> to vector<32x32xf32>
      %88 = arith.subf %86, %87 : vector<32x32xf32>
      %89 = math.absf %88 : vector<32x32xf32>
      %90 = arith.addf %83, %89 : vector<32x32xf32>
      %91 = vector.extract_strided_slice %24 {offsets = [0, 9], sizes = [32, 1], strides = [1, 1]} : vector<32x16xf32> to vector<32x1xf32>
      %92 = vector.extract_strided_slice %26 {offsets = [9, 0], sizes = [1, 32], strides = [1, 1]} : vector<16x32xf32> to vector<1x32xf32>
      %93 = vector.broadcast %91 : vector<32x1xf32> to vector<32x32xf32>
      %94 = vector.broadcast %92 : vector<1x32xf32> to vector<32x32xf32>
      %95 = arith.subf %93, %94 : vector<32x32xf32>
      %96 = math.absf %95 : vector<32x32xf32>
      %97 = arith.addf %90, %96 : vector<32x32xf32>
      %98 = vector.extract_strided_slice %24 {offsets = [0, 10], sizes = [32, 1], strides = [1, 1]} : vector<32x16xf32> to vector<32x1xf32>
      %99 = vector.extract_strided_slice %26 {offsets = [10, 0], sizes = [1, 32], strides = [1, 1]} : vector<16x32xf32> to vector<1x32xf32>
      %100 = vector.broadcast %98 : vector<32x1xf32> to vector<32x32xf32>
      %101 = vector.broadcast %99 : vector<1x32xf32> to vector<32x32xf32>
      %102 = arith.subf %100, %101 : vector<32x32xf32>
      %103 = math.absf %102 : vector<32x32xf32>
      %104 = arith.addf %97, %103 : vector<32x32xf32>
      %105 = vector.extract_strided_slice %24 {offsets = [0, 11], sizes = [32, 1], strides = [1, 1]} : vector<32x16xf32> to vector<32x1xf32>
      %106 = vector.extract_strided_slice %26 {offsets = [11, 0], sizes = [1, 32], strides = [1, 1]} : vector<16x32xf32> to vector<1x32xf32>
      %107 = vector.broadcast %105 : vector<32x1xf32> to vector<32x32xf32>
      %108 = vector.broadcast %106 : vector<1x32xf32> to vector<32x32xf32>
      %109 = arith.subf %107, %108 : vector<32x32xf32>
      %110 = math.absf %109 : vector<32x32xf32>
      %111 = arith.addf %104, %110 : vector<32x32xf32>
      %112 = vector.extract_strided_slice %24 {offsets = [0, 12], sizes = [32, 1], strides = [1, 1]} : vector<32x16xf32> to vector<32x1xf32>
      %113 = vector.extract_strided_slice %26 {offsets = [12, 0], sizes = [1, 32], strides = [1, 1]} : vector<16x32xf32> to vector<1x32xf32>
      %114 = vector.broadcast %112 : vector<32x1xf32> to vector<32x32xf32>
      %115 = vector.broadcast %113 : vector<1x32xf32> to vector<32x32xf32>
      %116 = arith.subf %114, %115 : vector<32x32xf32>
      %117 = math.absf %116 : vector<32x32xf32>
      %118 = arith.addf %111, %117 : vector<32x32xf32>
      %119 = vector.extract_strided_slice %24 {offsets = [0, 13], sizes = [32, 1], strides = [1, 1]} : vector<32x16xf32> to vector<32x1xf32>
      %120 = vector.extract_strided_slice %26 {offsets = [13, 0], sizes = [1, 32], strides = [1, 1]} : vector<16x32xf32> to vector<1x32xf32>
      %121 = vector.broadcast %119 : vector<32x1xf32> to vector<32x32xf32>
      %122 = vector.broadcast %120 : vector<1x32xf32> to vector<32x32xf32>
      %123 = arith.subf %121, %122 : vector<32x32xf32>
      %124 = math.absf %123 : vector<32x32xf32>
      %125 = arith.addf %118, %124 : vector<32x32xf32>
      %126 = vector.extract_strided_slice %24 {offsets = [0, 14], sizes = [32, 1], strides = [1, 1]} : vector<32x16xf32> to vector<32x1xf32>
      %127 = vector.extract_strided_slice %26 {offsets = [14, 0], sizes = [1, 32], strides = [1, 1]} : vector<16x32xf32> to vector<1x32xf32>
      %128 = vector.broadcast %126 : vector<32x1xf32> to vector<32x32xf32>
      %129 = vector.broadcast %127 : vector<1x32xf32> to vector<32x32xf32>
      %130 = arith.subf %128, %129 : vector<32x32xf32>
      %131 = math.absf %130 : vector<32x32xf32>
      %132 = arith.addf %125, %131 : vector<32x32xf32>
      %133 = vector.extract_strided_slice %24 {offsets = [0, 15], sizes = [32, 1], strides = [1, 1]} : vector<32x16xf32> to vector<32x1xf32>
      %134 = vector.extract_strided_slice %26 {offsets = [15, 0], sizes = [1, 32], strides = [1, 1]} : vector<16x32xf32> to vector<1x32xf32>
      %135 = vector.broadcast %133 : vector<32x1xf32> to vector<32x32xf32>
      %136 = vector.broadcast %134 : vector<1x32xf32> to vector<32x32xf32>
      %137 = arith.subf %135, %136 : vector<32x32xf32>
      %138 = math.absf %137 : vector<32x32xf32>
      %139 = arith.addf %132, %138 : vector<32x32xf32>
      %cst_13 = arith.constant 5.000000e-01 : f32
      %140 = vector.broadcast %cst_13 : f32 to vector<32x32xf32>
      %141 = arith.mulf %140, %139 : vector<32x32xf32>
      %cst_14 = arith.constant 1.000000e+00 : f32
      %142 = vector.broadcast %cst_14 : f32 to vector<32x32xf32>
      %143 = arith.subf %142, %141 : vector<32x32xf32>
      %c32_i32 = arith.constant 32 : i32
      %144 = arith.muli %arg0, %c32_i32 : i32
      %145 = tpu.iota {dimensions = array<i32: 0>} : vector<32x32xi32>
      %146 = vector.broadcast %144 : i32 to vector<32x32xi32>
      %147 = arith.addi %146, %145 : vector<32x32xi32>
      %c32_i32_15 = arith.constant 32 : i32
      %148 = arith.muli %arg1, %c32_i32_15 : i32
      %149 = tpu.iota {dimensions = array<i32: 1>} : vector<32x32xi32>
      %150 = vector.broadcast %148 : i32 to vector<32x32xi32>
      %151 = arith.addi %150, %149 : vector<32x32xi32>
      %152 = arith.cmpi sgt, %151, %147 : vector<32x32xi32>
      %cst_16 = arith.constant 1.000000e+30 : f32
      %153 = vector.broadcast %cst_16 : f32 to vector<32x32xf32>
      %154 = arith.select %152, %23, %153 : vector<32x32xi1>, vector<32x32xf32>
      %c0_17 = arith.constant 0 : index
      %c0_18 = arith.constant 0 : index
      %155 = vector.load %arg6[%c0_17, %c0_18] : memref<32x32xf32, #tpu.memory_space<vmem>>, vector<32x32xf32>
      tpu.vector_store %arg6[%c0_17, %c0_18], %154 {strides = array<i32>} : memref<32x32xf32, #tpu.memory_space<vmem>>, vector<32x32xf32>,
      %cst_19 = arith.constant -1.000000e+30 : f32
      %156 = vector.broadcast %cst_19 : f32 to vector<32x32xf32>
      %157 = arith.select %152, %143, %156 : vector<32x32xi1>, vector<32x32xf32>
      %c0_20 = arith.constant 0 : index
      %c0_21 = arith.constant 0 : index
      %158 = vector.load %arg7[%c0_20, %c0_21] : memref<32x32xf32, #tpu.memory_space<vmem>>, vector<32x32xf32>
      tpu.vector_store %arg7[%c0_20, %c0_21], %157 {strides = array<i32>} : memref<32x32xf32, #tpu.memory_space<vmem>>, vector<32x32xf32>,
    } else {
    }
    return
  }
  func.func @transform_0(%arg0: i32, %arg1: i32) -> (i32, i32) {
    %c0_i32 = arith.constant 0 : i32
    %c0_i32_0 = arith.constant 0 : i32
    return %arg0, %c0_i32 : i32, i32
  }
  func.func @transform_1(%arg0: i32, %arg1: i32) -> (i32, i32) {
    %c0_i32 = arith.constant 0 : i32
    %c0_i32_0 = arith.constant 0 : i32
    return %arg1, %c0_i32 : i32, i32
  }
  func.func @transform_2(%arg0: i32, %arg1: i32) -> (i32, i32) {
    %c0_i32 = arith.constant 0 : i32
    %c0_i32_0 = arith.constant 0 : i32
    return %arg0, %c0_i32 : i32, i32
  }
  func.func @transform_3(%arg0: i32, %arg1: i32) -> (i32, i32) {
    %c0_i32 = arith.constant 0 : i32
    %c0_i32_0 = arith.constant 0 : i32
    return %arg1, %c0_i32 : i32, i32
  }
  func.func @transform_4(%arg0: i32, %arg1: i32) -> (i32, i32) {
    %c0_i32 = arith.constant 0 : i32
    return %arg0, %arg1 : i32, i32
  }
  func.func @transform_5(%arg0: i32, %arg1: i32) -> (i32, i32) {
    %c0_i32 = arith.constant 0 : i32
    return %arg0, %arg1 : i32, i32
  }
}

</mosaic_0001>

<bundles_post_ra>
// kernel: tpu_custom_call.1
= control target key start
LH: loop header
LB: loop body
LE: loop exit
PB: predicated region body
PF: predicated region fallthrough
CT: control target
= control target key end

     0   :  { %11 = vsyncpa [#allocation3], 0  ;;  %vm50_vm0 = vcmask 523264   ;;  %v1020_v4 = vmov 0   ;;  %s1576_s0 = inlined_call_operand.vmem [shape: f32[32,64], index: 0, kind: input, shape index: {}]   ;;  %s1577_s1 = inlined_call_operand.vmem [shape: f32[32,64], index: 1, kind: input, shape index: {}]   ;;  %s1578_s2 = inlined_call_operand.vmem [shape: f32[32,16], index: 2, kind: input, shape index: {}]   ;;  %s1579_s3 = inlined_call_operand.vmem [shape: f32[32,16], index: 3, kind: input, shape index: {}]   ;;  %s1580_s4 = inlined_call_operand.hbm [shape: f32[32,32], index: 4, kind: output, shape index: {0}]   ;;  %s1581_s5 = inlined_call_operand.hbm [shape: f32[32,32], index: 5, kind: output, shape index: {1}]  }
   0x1   :  { %v244_v0 = vld [vmem:[%s1579_s3] sm:$0xff]  ;;  %v39_v3 = vld [vmem:[%s1576_s0 + $0x8] sm:$0xff]  ;;  %940 = vset.pattern.permute.xlu0 %v1020_v4  ;;  %v40_v9 = vld [vmem:[%s1576_s0 + $0x10] sm:$0xff] }
   0x2   :  { %v38_v1 = vld [vmem:[%s1576_s0] sm:$0xff]  ;;  %248 = vxpose.xlu1.b32.start [1/4] (short) (narrow) %v244_v0, 16  ;;  %v245_v5 = vld [vmem:[%s1579_s3 + $0x8] sm:$0xff]  ;;  %v47_v6 = vmul.f32 %v39_v3, %v39_v3  ;;  %900 = vmatprep.mubr.msk.f32.mxu1 %vm50_vm0, %v40_v9  ;;  %v44_v13 = vld [vmem:[%s1577_s1 + $0x10] sm:$0xff] }
   0x3   :  { %v46_v2 = vmul.f32 %v38_v1, %v38_v1  ;;  %v42_v7 = vld [vmem:[%s1577_s1] sm:$0xff]  ;;  %897 = vmatprep.mubr.msk.f32.mxu0 %vm50_vm0, %v38_v1  ;;  %v43_v10 = vld [vmem:[%s1577_s1 + $0x8] sm:$0xff]  ;;  %v45_v15 = vld [vmem:[%s1577_s1 + $0x18] sm:$0xff] }
   0x4   :  { %v54_v11 = vsel %vm50_vm0, %v47_v6, 0.0  ;;  %v63_v12 = vmul.f32 %v42_v7, %v42_v7  ;;  %v903_v14 = vpack.c.bf16 %v43_v10, %v42_v7  ;;  %vm1103_vm1 = vmpackc.low %vm50_vm0, %vm50_vm0  ;;  %v246_v17 = vld [vmem:[%s1579_s3 + $0x10] sm:$0xff]  ;;  %v909_v18 = vpack.c.bf16 %v45_v15, %v44_v13 }
   0x5   :  { %v51_v8 = vsel %vm50_vm0, %v46_v2, 0.0 }
   0x6   :  { %52 = vadd.xlane.f32.xlu0 %v51_v8  ;;  %249 = vxpose.xlu1.b32.cont [2/4] (short) (narrow) %v245_v5, 16 }
   0x7   :  { %12 = vsyncpa [#allocation5], 0  ;;  %905 = vmatprep.subr.msk.bf16.mxu0 %vm1103_vm1, %v903_v14  ;;  %915 = vmatprep.subr.msk.bf16.mxu1 %vm1103_vm1, %v903_v14  ;;  %v67_v19 = vsel %vm50_vm0, %v63_v12, 0.0  ;;  %v65_v20 = vmul.f32 %v44_v13, %v44_v13  ;;  %v247_v21 = vld [vmem:[%s1579_s3 + $0x18] sm:$0xff]  ;;  %v1139_v24 = vld [vmem:[%s1578_s2] sm:$0xff]  ;;  %v1021_v25 = vmov 1   ;;  %v48_v27 = vmul.f32 %v40_v9, %v40_v9 }
   0x8   :  { %908 = vmatpush3.bf16.xpose.msk.msra.mxu0 %vm1103_vm1, %v903_v14  ;;  %917 = vmatpush3.bf16.xpose.msk.msra.mxu1 %vm1103_vm1, %v903_v14  ;;  %v41_v23 = vld [vmem:[%s1576_s0 + $0x18] sm:$0xff]  ;;  %v1153_v29 = vld [vmem:[%s1578_s2 + $0x8] sm:$0xff]  ;;  %v1022_v31 = vmov 2   ;;  %v64_v33 = vmul.f32 %v43_v10, %v43_v10  ;;  %v1023_v34 = vmov 3   ;;  %v66_v36 = vmul.f32 %v45_v15, %v45_v15  ;;  %v1167_v40 = vld [vmem:[%s1578_s2 + $0x10] sm:$0xff] }
   0x9   :  { %911 = vmatprep.subr.msk.bf16.mxu0 %vm1103_vm1, %v909_v18  ;;  %916 = vmatprep.subr.msk.bf16.mxu1 %vm1103_vm1, %v909_v18  ;;  %v73_v22 = vsel %vm50_vm0, %v65_v20, 0.0  ;;  %v1146_v26 = vld [vmem:[%s1578_s2 + $0x18] sm:$0xff]  ;;  %v57_v28 = vsel %vm50_vm0, %v48_v27, 0.0  ;;  %v49_v30 = vmul.f32 %v41_v23, %v41_v23  ;;  %v1024_v38 = vmov 4   ;;  %s1036_s2 = smov [#allocation2]  }
   0xa   :  { %55 = vadd.xlane.f32.xlu0 %v54_v11  ;;  %250 = vxpose.xlu1.b32.cont [3/4] (short) (narrow) %v246_v17, 16  ;;  %v70_v35 = vsel %vm50_vm0, %v64_v33, 0.0  ;;  %v76_v37 = vsel %vm50_vm0, %v66_v36, 0.0  ;;  %v1025_v39 = vmov 5   ;;  %v1026_v42 = vmov 6   ;;  %s846_s22 = sshll.u32 %s1036_s2, 4  ;;  %s847_s22 = int_to_ptr.vmem [resolvable:$true] %s846_s22 }
   0xb   :  { %v60_v32 = vsel %vm50_vm0, %v49_v30, 0.0  ;;  %v220_v44 = vlaneseq  ;;  %v1027_v48 = vmov 7   ;;  %v1028_v56 = vmov 8   ;;  %s972_s23 = scalar_lea.vmem %s847_s22, 512  ;;  %p977_p1 = scmp.lt.s32.totalorder %s847_s22, %s847_s22 }
   0xc   :  { %v1029_v5 = vmov 9   ;;  %v1030_v12 = vmov 10   ;;  %v1031_v16 = vmov 11   ;;  %v1032_v20 = vmov 12   ;;  %p973_p0 = scmp.ne.s32.totalorder %s847_s22, %s972_s23  ;;  %p978_p2 = scmp.lt.s32.totalorder %s972_s23, %s972_s23 }
   0xd   :  { %v1191_v46 = vshrl.u32 %v220_v44, 7  ;;  %vm828_vm3 = vcmask 261120  }
   0xe   :  { %68 = vadd.xlane.f32.xlu0 %v67_v19  ;;  %251 = vxpose.xlu1.b32.end [4/4] (short) (narrow) %v247_v21, 16  ;;  %p979_p3 = por %p978_p2, %p977_p1 }
   0xf   :  { %v1195_v47 = vsub.s32 0, %v1191_v46  ;;  %v334_v52 = vsub.s32 1, %v1191_v46  ;;  %v366_v60 = vsub.s32 2, %v1191_v46  ;;  %v398_v2 = vsub.s32 3, %v1191_v46 }
  0x10   :  { %914 = vmatpush3.bf16.xpose.msk.msra.mxu0 %vm1103_vm1, %v909_v18  ;;  %918 = vmatpush3.bf16.xpose.msk.msra.mxu1 %vm1103_vm1, %v909_v18  ;;  %p980_p4 = pnand %p979_p3, %p973_p0 }
  0x12   :  { %74 = vadd.xlane.f32.xlu0 %v73_v22 }
  0x17   :  { %898 = vmatmul.mubr.msk.f32.vlgmr.msra.gmra.mrb[0].mxu0 %vm50_vm0, %v39_v3  ;;  %901 = vmatmul.mubr.msk.f32.vlgmr.msra.gmra.mrb[0].mxu1 %vm50_vm0, %v41_v23 }
  0x28   :  { %282 = vperm.xlu0 %940, %v1139_v24  }
  0x2c   :  { %942 = vset.pattern.permute.xlu0 %v1021_v25  ;;  %941 = vset.pattern.permute.xlu1 %v1020_v4 }
  0x2d   :  { %317 = vperm.xlu0 %942, %v1139_v24  }
  0x31   :  { %329 = vperm.xlu0 %942, %v1146_v26  }
  0x35   :  { %945 = vset.pattern.permute.xlu0 %v1022_v31  ;;  %58 = vadd.xlane.f32.xlu1 %v57_v28 }
  0x36   :  { %353 = vperm.xlu0 %945, %v1153_v29  }
  0x39   :  { %61 = vadd.xlane.f32.xlu1 %v60_v32 }
  0x3a   :  { %946 = vset.pattern.permute.xlu0 %v1023_v34 }
  0x3b   :  { %381 = vperm.xlu0 %946, %v1139_v24  }
  0x3d   :  { %71 = vadd.xlane.f32.xlu1 %v70_v35  ;;  %v1033_v35 = vmov 13  }
  0x3f   :  { %393 = vperm.xlu0 %946, %v1146_v26  }
  0x41   :  { %77 = vadd.xlane.f32.xlu1 %v76_v37 }
  0x43   :  { %949 = vset.pattern.permute.xlu0 %v1024_v38 }
  0x44   :  { %417 = vperm.xlu0 %949, %v1153_v29  }
  0x48   :  { %950 = vset.pattern.permute.xlu0 %v1025_v39 }
  0x49   :  { %445 = vperm.xlu0 %950, %v1139_v24  }
  0x52   :  { %287 = vperm.xlu1 %941, %v1153_v29  }
  0x56   :  { %292 = vperm.xlu1 %941, %v1167_v40  }
  0x5a   :  { %297 = vperm.xlu1 %941, %v1146_v26  }
  0x5e   :  { %943 = vset.pattern.permute.xlu1 %v1021_v25 }
  0x5f   :  { %321 = vperm.xlu1 %943, %v1153_v29  }
  0x63   :  { %325 = vperm.xlu1 %943, %v1167_v40  }
  0x67   :  { %944 = vset.pattern.permute.xlu1 %v1022_v31 }
  0x68   :  { %349 = vperm.xlu1 %944, %v1139_v24  }
  0x6c   :  { %357 = vperm.xlu1 %944, %v1167_v40  }
  0x70   :  { %361 = vperm.xlu1 %944, %v1146_v26  }
  0x74   :  { %947 = vset.pattern.permute.xlu1 %v1023_v34 }
  0x75   :  { %385 = vperm.xlu1 %947, %v1153_v29  }
  0x79   :  { %389 = vperm.xlu1 %947, %v1167_v40  }
  0x7d   :  { %948 = vset.pattern.permute.xlu1 %v1024_v38 }
  0x7e   :  { %413 = vperm.xlu1 %948, %v1139_v24  }
  0x82   :  { %421 = vperm.xlu1 %948, %v1167_v40   ;;  %v1198_v50 = vpop.trf.xlu1 }
  0x83   :  { %v1203_v51 = vrot.slane %v1198_v50, %v1195_v47  ;;  %v1211_v55 = vrot.slane %v1198_v50, %v334_v52  ;;  %v1224_v1 = vrot.slane %v1198_v50, %v366_v60  ;;  %v1233_v6 = vrot.slane %v1198_v50, %v398_v2 }
  0x86   :  { %425 = vperm.xlu1 %948, %v1146_v26   ;;  %v1238_v9 = vpop.trf.xlu1 }
  0x8a   :  { %951 = vset.pattern.permute.xlu1 %v1025_v39 }
  0x8b   :  { %449 = vperm.xlu1 %951, %v1153_v29  }
  0x8f   :  { %453 = vperm.xlu1 %951, %v1167_v40  }
  0x93   :  { %v1183_v41 = vpop.xlane.xlu0 %52  ;;  %952 = vset.pattern.permute.xlu1 %v1026_v42 }
  0x94   :  { %477 = vperm.xlu1 %952, %v1139_v24  }
  0x97   :  { %v1187_v43 = vpop.xlane.xlu0 %55 }
  0x98   :  { %485 = vperm.xlu1 %952, %v1167_v40  }
  0x9b   :  { %v69_v45 = vpop.xlane.xlu0 %68 }
  0x9c   :  { %188 = vxpose.xlu0.b32.start [1/4] (short) (narrow) %v69_v45, 8  ;;  %489 = vperm.xlu1 %952, %v1146_v26  }
  0x9f   :  { %v75_v49 = vpop.xlane.xlu0 %74 }
  0xa0   :  { %955 = vset.pattern.permute.xlu1 %v1027_v48 }
  0xa1   :  { %513 = vperm.xlu1 %955, %v1153_v29  }
  0xa5   :  { %517 = vperm.xlu1 %955, %v1167_v40  }
  0xa7   :  { %v283_v53 = vpop.permute.xlu0 %282 }
  0xa8   :  { %v304_v54 = vsub.f32 %v283_v53, %v1203_v51 }
  0xa9   :  { %956 = vset.pattern.permute.xlu1 %v1028_v56 }
  0xaa   :  { %541 = vperm.xlu1 %956, %v1139_v24   ;;  %v308_v58 = vand.u32 2147483647, %v304_v54 }
  0xac   :  { %v318_v57 = vpop.permute.xlu0 %317 }
  0xad   :  { %v336_v59 = vsub.f32 %v318_v57, %v1211_v55 }
  0xae   :  { %549 = vperm.xlu1 %956, %v1167_v40  }
  0xaf   :  { %v340_v61 = vand.u32 2147483647, %v336_v59  ;;  %v1034_v59 = vmov 14  }
  0xb0   :  { %v330_v62 = vpop.permute.xlu0 %329 }
  0xb1   :  { %v339_v63 = vsub.f32 %v330_v62, %v1211_v55  ;;  %v1219_v0 = vadd.f32 %v340_v61, %v308_v58 }
  0xb2   :  { %553 = vperm.xlu1 %956, %v1146_v26  }
  0xb3   :  { %v343_v28 = vand.u32 2147483647, %v339_v63 }
  0xb5   :  { %v354_v3 = vpop.permute.xlu0 %353 }
  0xb6   :  { %v369_v4 = vsub.f32 %v354_v3, %v1224_v1  ;;  %959 = vset.pattern.permute.xlu1 %v1029_v5 }
  0xb7   :  { %577 = vperm.xlu1 %959, %v1153_v29  }
  0xb8   :  { %v373_v39 = vand.u32 2147483647, %v369_v4 }
  0xba   :  { %v382_v7 = vpop.permute.xlu0 %381 }
  0xbb   :  { %v400_v8 = vsub.f32 %v382_v7, %v1233_v6  ;;  %581 = vperm.xlu1 %959, %v1167_v40  }
  0xbd   :  { %v404_v3 = vand.u32 2147483647, %v400_v8 }
  0xbe   :  { %v1240_v10 = vpop.permute.xlu0 %393 }
  0xbf   :  { %v403_v11 = vsub.f32 %v1240_v10, %v1233_v6  ;;  %960 = vset.pattern.permute.xlu1 %v1030_v12 }
  0xc0   :  { %605 = vperm.xlu1 %960, %v1139_v24  }
  0xc2   :  { %v1246_v13 = vpop.xlane.xlu1 %58 }
  0xc4   :  { %613 = vperm.xlu1 %960, %v1167_v40  }
  0xc6   :  { %v1249_v14 = vpop.xlane.xlu1 %61 }
  0xc8   :  { %617 = vperm.xlu1 %960, %v1146_v26  }
  0xca   :  { %v72_v15 = vpop.xlane.xlu1 %71 }
  0xcb   :  { %189 = vxpose.xlu0.b32.cont [2/4] (short) (narrow) %v72_v15, 8 }
  0xcc   :  { %963 = vset.pattern.permute.xlu1 %v1031_v16 }
  0xcd   :  { %641 = vperm.xlu1 %963, %v1153_v29  }
  0xce   :  { %v78_v17 = vpop.xlane.xlu1 %77 }
  0xcf   :  { %190 = vxpose.xlu0.b32.cont [3/4] (short) (narrow) %v75_v49, 8 }
  0xd1   :  { %645 = vperm.xlu1 %963, %v1167_v40  }
  0xd2   :  { %v288_v18 = vpop.permute.xlu1 %287 }
  0xd3   :  { %v305_v19 = vsub.f32 %v288_v18, %v1203_v51  ;;  %191 = vxpose.xlu0.b32.end [4/4] (short) (narrow) %v78_v17, 8 }
  0xd5   :  { %964 = vset.pattern.permute.xlu1 %v1032_v20  ;;  %v309_v33 = vand.u32 2147483647, %v305_v19  ;;  %v430_v19 = vsub.s32 4, %v1191_v46 }
  0xd6   :  { %669 = vperm.xlu1 %964, %v1139_v24   ;;  %v293_v21 = vpop.permute.xlu1 %292 }
  0xd7   :  { %v306_v22 = vsub.f32 %v293_v21, %v1203_v51  ;;  %v431_v8 = vrot.slane %v1198_v50, %v430_v19 }
  0xd9   :  { %v310_v45 = vand.u32 2147483647, %v306_v22 }
  0xda   :  { %677 = vperm.xlu1 %964, %v1167_v40   ;;  %v298_v23 = vpop.permute.xlu1 %297 }
  0xdb   :  { %v307_v25 = vsub.f32 %v298_v23, %v1203_v51 }
  0xdd   :  { %v311_v27 = vand.u32 2147483647, %v307_v25 }
  0xde   :  { %681 = vperm.xlu1 %964, %v1146_v26   ;;  %v322_v30 = vpop.permute.xlu1 %321 }
  0xdf   :  { %v347_v31 = vadd.f32 %v343_v28, %v311_v27  ;;  %v337_v32 = vsub.f32 %v322_v30, %v1211_v55  ;;  %v407_v27 = vand.u32 2147483647, %v403_v11 }
  0xe1   :  { %v341_v34 = vand.u32 2147483647, %v337_v32 }
  0xe2   :  { %967 = vset.pattern.permute.xlu1 %v1033_v35  ;;  %v326_v36 = vpop.permute.xlu1 %325 }
  0xe3   :  { %v345_v37 = vadd.f32 %v341_v34, %v309_v33  ;;  %v338_v38 = vsub.f32 %v326_v36, %v1211_v55  ;;  %705 = vperm.xlu1 %967, %v1153_v29   ;;  %v1035_v36 = vmov 15  }
  0xe5   :  { %v342_v49 = vand.u32 2147483647, %v338_v38  ;;  %v377_v51 = vadd.f32 %v373_v39, %v345_v37 }
  0xe7   :  { %v346_v53 = vadd.f32 %v342_v49, %v310_v45  ;;  %709 = vperm.xlu1 %967, %v1167_v40   ;;  %v350_v54 = vpop.permute.xlu1 %349 }
  0xe8   :  { %v368_v57 = vsub.f32 %v350_v54, %v1224_v1 }
  0xea   :  { %v372_v58 = vand.u32 2147483647, %v368_v57  ;;  %v1269_v62 = vpop.f32.mrb[0].mxu0  ;;  %v1274_v4 = vpop.f32.mrb[0].mxu1 }
  0xeb   :  { %968 = vset.pattern.permute.xlu1 %v1034_v59  ;;  %v358_v61 = vpop.permute.xlu1 %357  ;;  %v1276_v7 = vpop.f32.mrb[1].mxu0 }
  0xec   :  { %v376_v55 = vadd.f32 %v372_v58, %v1219_v0  ;;  %v370_v63 = vsub.f32 %v358_v61, %v1224_v1  ;;  %733 = vperm.xlu1 %968, %v1139_v24   ;;  %v1278_v15 = vpop.f32.mrb[1].mxu1  ;;  %v418_v0 = vpop.permute.xlu0 %417  ;;  %v462_v61 = vsub.s32 5, %v1191_v46 }
  0xed   :  { %v433_v32 = vsub.f32 %v418_v0, %v431_v8  ;;  %v494_v0 = vsub.s32 6, %v1191_v46 }
  0xee   :  { %v374_v17 = vand.u32 2147483647, %v370_v63  ;;  %v408_v18 = vadd.f32 %v404_v3, %v376_v55 }
  0xef   :  { %v362_v21 = vpop.permute.xlu1 %361  ;;  %v437_v38 = vand.u32 2147483647, %v433_v32 }
  0xf0   :  { %v378_v22 = vadd.f32 %v374_v17, %v346_v53  ;;  %v371_v23 = vsub.f32 %v362_v21, %v1224_v1  ;;  %741 = vperm.xlu1 %968, %v1167_v40  }
  0xf2   :  { %v375_v25 = vand.u32 2147483647, %v371_v23 }
  0xf4   :  { %v379_v28 = vadd.f32 %v375_v25, %v347_v31  ;;  %745 = vperm.xlu1 %968, %v1146_v26   ;;  %v386_v30 = vpop.permute.xlu1 %385 }
  0xf5   :  { %v401_v33 = vsub.f32 %v386_v30, %v1233_v6  ;;  %v1320_v30 = vrot.slane %v1198_v50, %v494_v0 }
  0xf6   :  { %v411_v1 = vadd.f32 %v407_v27, %v379_v28 }
  0xf7   :  { %v405_v34 = vand.u32 2147483647, %v401_v33 }
  0xf8   :  { %971 = vset.pattern.permute.xlu1 %v1035_v36  ;;  %v390_v37 = vpop.permute.xlu1 %389 }
  0xf9   :  { %v409_v39 = vadd.f32 %v405_v34, %v377_v51  ;;  %v402_v45 = vsub.f32 %v390_v37, %v1233_v6  ;;  %769 = vperm.xlu1 %971, %v1153_v29  }
  0xfb   :  { %v406_v10 = vand.u32 2147483647, %v402_v45  ;;  %v441_v11 = vadd.f32 %v437_v38, %v409_v39 }
  0xfc   :  { %457 = vperm.xlu0 %950, %v1146_v26  }
  0xfd   :  { %v410_v31 = vadd.f32 %v406_v10, %v378_v22  ;;  %773 = vperm.xlu1 %971, %v1167_v40   ;;  %v414_v49 = vpop.permute.xlu1 %413  ;;  %v446_v22 = vpop.permute.xlu0 %445 }
  0xfe   :  { %v432_v53 = vsub.f32 %v414_v49, %v431_v8 }
 0x100   :  { %v436_v54 = vand.u32 2147483647, %v432_v53  ;;  %953 = vset.pattern.permute.xlu0 %v1026_v42  ;;  %v1304_v42 = vrot.slane %v1198_v50, %v462_v61 }
 0x101   :  { %v422_v57 = vpop.permute.xlu1 %421  ;;  %481 = vperm.xlu0 %953, %v1153_v29  }
 0x102   :  { %v440_v51 = vadd.f32 %v436_v54, %v408_v18  ;;  %v434_v58 = vsub.f32 %v422_v57, %v431_v8  ;;  %v464_v27 = vsub.f32 %v446_v22, %v1304_v42 }
 0x104   :  { %v438_v6 = vand.u32 2147483647, %v434_v58 }
 0x105   :  { %v426_v55 = vpop.permute.xlu1 %425  ;;  %954 = vset.pattern.permute.xlu0 %v1027_v48 }
 0x106   :  { %v442_v63 = vadd.f32 %v438_v6, %v410_v31  ;;  %v435_v3 = vsub.f32 %v426_v55, %v431_v8  ;;  %509 = vperm.xlu0 %954, %v1139_v24  }
 0x108   :  { %v439_v40 = vand.u32 2147483647, %v435_v3 }
 0x10a   :  { %v1306_v17 = vadd.f32 %v439_v40, %v411_v1  ;;  %v450_v18 = vpop.permute.xlu1 %449  ;;  %521 = vperm.xlu0 %954, %v1146_v26   ;;  %v1374_v40 = vadd.s32 8, %v1191_v46 }
 0x10b   :  { %v465_v21 = vsub.f32 %v450_v18, %v1304_v42  ;;  %v228_v18 = vmul.f32 2.0, %v1276_v7 }
 0x10d   :  { %v469_v23 = vand.u32 2147483647, %v465_v21  ;;  %v230_v21 = vmul.f32 2.0, %v1278_v15 }
 0x10e   :  { %v454_v48 = vpop.permute.xlu1 %453  ;;  %957 = vset.pattern.permute.xlu0 %v1028_v56  ;;  %v468_v56 = vand.u32 2147483647, %v464_v27 }
 0x10f   :  { %v1312_v25 = vadd.f32 %v469_v23, %v441_v11  ;;  %v466_v8 = vsub.f32 %v454_v48, %v1304_v42  ;;  %545 = vperm.xlu0 %957, %v1153_v29   ;;  %v1391_v48 = vadd.s32 16, %v1191_v46 }
 0x110   :  { %v472_v34 = vadd.f32 %v468_v56, %v440_v51 }
 0x111   :  { %v470_v28 = vand.u32 2147483647, %v466_v8 }
 0x113   :  { %v474_v32 = vadd.f32 %v470_v28, %v442_v63  ;;  %v478_v33 = vpop.permute.xlu1 %477  ;;  %958 = vset.pattern.permute.xlu0 %v1029_v5  ;;  %v526_v5 = vsub.s32 7, %v1191_v46 }
 0x114   :  { %v496_v1 = vsub.f32 %v478_v33, %v1320_v30  ;;  %573 = vperm.xlu0 %958, %v1139_v24  }
 0x115   :  { %v1341_v53 = vrot.slane %v1198_v50, %v526_v5 }
 0x116   :  { %v500_v37 = vand.u32 2147483647, %v496_v1 }
 0x117   :  { %v486_v38 = vpop.permute.xlu1 %485 }
 0x118   :  { %v1325_v39 = vadd.f32 %v500_v37, %v472_v34  ;;  %v498_v45 = vsub.f32 %v486_v38, %v1320_v30  ;;  %585 = vperm.xlu0 %958, %v1146_v26  }
 0x11a   :  { %v502_v10 = vand.u32 2147483647, %v498_v45 }
 0x11b   :  { %v1329_v11 = vpop.permute.xlu1 %489 }
 0x11c   :  { %v506_v31 = vadd.f32 %v502_v10, %v474_v32  ;;  %961 = vset.pattern.permute.xlu0 %v1030_v12 }
 0x11d   :  { %609 = vperm.xlu0 %961, %v1153_v29  }
 0x120   :  { %v1334_v49 = vpop.permute.xlu1 %513 }
 0x121   :  { %962 = vset.pattern.permute.xlu0 %v1031_v16 }
 0x122   :  { %637 = vperm.xlu0 %962, %v1139_v24  }
 0x124   :  { %v518_v54 = vpop.permute.xlu1 %517 }
 0x125   :  { %v530_v57 = vsub.f32 %v518_v54, %v1341_v53 }
 0x126   :  { %649 = vperm.xlu0 %962, %v1146_v26  }
 0x127   :  { %v534_v12 = vand.u32 2147483647, %v530_v57 }
 0x129   :  { %v1345_v51 = vadd.f32 %v534_v12, %v506_v31  ;;  %v1347_v58 = vpop.permute.xlu1 %541 }
 0x12a   :  { %965 = vset.pattern.permute.xlu0 %v1032_v20 }
 0x12b   :  { %673 = vperm.xlu0 %965, %v1153_v29  }
 0x12d   :  { %v1351_v16 = vpop.permute.xlu1 %549 }
 0x12f   :  { %966 = vset.pattern.permute.xlu0 %v1033_v35 }
 0x130   :  { %701 = vperm.xlu0 %966, %v1139_v24  }
 0x131   :  { %v1355_v50 = vpop.permute.xlu1 %553 }
 0x134   :  { %713 = vperm.xlu0 %966, %v1146_v26  }
 0x136   :  { %v1358_v6 = vpop.permute.xlu1 %577 }
 0x138   :  { %969 = vset.pattern.permute.xlu0 %v1034_v59 }
 0x139   :  { %737 = vperm.xlu0 %969, %v1153_v29   ;;  %v1377_v29 = vand.u32 127, %v220_v44 }
 0x13a   :  { %v1362_v55 = vpop.permute.xlu1 %581 }
 0x13b   :  { %vm821_vm2 = vcmp.gt.s32.totalorder %v1377_v29, %v1374_v40  ;;  %vm820_vm5 = vcmp.gt.s32.totalorder %v1377_v29, %v1191_v46  ;;  %vm822_vm6 = vcmp.gt.s32.totalorder %v1377_v29, %v1391_v48 }
 0x13d   :  { %970 = vset.pattern.permute.xlu0 %v1035_v36  ;;  %v229_v36 = vmul.f32 2.0, %v1269_v62 }
 0x13e   :  { %765 = vperm.xlu0 %970, %v1139_v24   ;;  %v231_v24 = vmul.f32 2.0, %v1274_v4 }
 0x13f   :  { %v1366_v20 = vpop.permute.xlu1 %605 }
 0x142   :  { %777 = vperm.xlu0 %970, %v1146_v26   ;;  %v1384_v26 = vadd.s32 24, %v1191_v46 }
 0x143   :  { %v1369_v35 = vpop.permute.xlu1 %613 }
 0x144   :  { %vm823_vm4 = vcmp.gt.s32.totalorder %v1377_v29, %v1384_v26 }
 0x147   :  { %v1371_v63 = vpop.permute.xlu1 %617  ;;  %v204_v3 = vpop.trf.xlu0 }
 0x148   :  { %v223_v59 = vrot.slane %v204_v3, %v1195_v47 }
 0x14a   :  { %v225_v22 = vadd.f32 %v223_v59, %v1187_v43  ;;  %v227_v23 = vadd.f32 %v223_v59, %v1249_v14  ;;  %v224_v44 = vadd.f32 %v223_v59, %v1183_v41  ;;  %v226_v62 = vadd.f32 %v223_v59, %v1246_v13 }
 0x14c   :  { %v233_v8 = vsub.f32 %v225_v22, %v229_v36  ;;  %v235_v4 = vsub.f32 %v227_v23, %v231_v24  ;;  %v232_v7 = vsub.f32 %v224_v44, %v228_v18  ;;  %v1396_v27 = vpop.permute.xlu1 %641  ;;  %v234_v41 = vsub.f32 %v226_v62, %v230_v21 }
 0x14e   :  { %v237_v43 = vmax.f32 %v233_v8, 0.0  ;;  %v239_v13 = vmax.f32 %v235_v4, 0.0  ;;  %v236_v14 = vmax.f32 %v232_v7, 0.0  ;;  %v238_v15 = vmax.f32 %v234_v41, 0.0 }
 0x150   :  { %v825_v28 = vsel %vm821_vm2, %v237_v43, 1e+30  ;;  %v827_v32 = vsel %vm823_vm4, %v239_v13, 1e+30  ;;  %v824_v33 = vsel %vm820_vm5, %v236_v14, 1e+30  ;;  %v646_v56 = vpop.permute.xlu1 %645 }
 0x151   :  { %830 = vst.msk [vmem:[#allocation2 + $0x8] sm:$0xff] %vm828_vm3, %v825_v28  ;;  %832 = vst.msk [vmem:[#allocation2 + $0x18] sm:$0xff] %vm828_vm3, %v827_v32  ;;  %v826_v1 = vsel %vm822_vm6, %v238_v15, 1e+30 }
 0x152   :  { %829 = vst.msk [vmem:[#allocation2] sm:$0xff] %vm828_vm3, %v824_v33  ;;  %831 = vst.msk [vmem:[#allocation2 + $0x10] sm:$0xff] %vm828_vm3, %v826_v1 }
 0x153   :  { %983 = shalt.err (!%p980_p4)
}
 0x154   :  { %s984_s26 = scalar_lea.hbm %s1580_s4, 512 }
 0x155   :  { %p985_p5 = scmp.ne.s32.totalorder %s1580_s4, %s984_s26  ;;  %p988_p6 = scmp.lt.u32.totalorder %s984_s26, %s1580_s4 }
 0x157   :  { %p990_p7 = pnand %p988_p6, %p985_p5 }
 0x159   :  { %993 = shalt.err (!%p990_p7)
}
 0x15a   :  { %s1037_s6 = smov 128   ;;  %s1038_s7 = smov 8   ;;  %v1435_v34 = vpop.permute.xlu1 %669  ;;  %v1443_v31 = vrot.slane %v1238_v9, %v1195_v47  ;;  %v1450_v57 = vrot.slane %v1238_v9, %v334_v52  ;;  %v1459_v59 = vrot.slane %v1238_v9, %v366_v60  ;;  %v1495_v14 = vrot.slane %v1238_v9, %v526_v5 }
 0x15b   :  { %852 = dma.vmem_to_hbm [thread:$0]  %s847_s22, 512, %s1580_s4, [#allocation3], %s1037_s6, %s1037_s6, %s1038_s7  }
 0x15c   :  { %v562_v54 = vsub.f32 %v1351_v16, %v1443_v31  ;;  %v594_v3 = vsub.f32 %v1362_v55, %v1450_v57  ;;  %v626_v36 = vsub.f32 %v1369_v35, %v1459_v59  ;;  %v1466_v16 = vrot.slane %v1238_v9, %v398_v2  ;;  %s1039_s4 = smov [#allocation4]  }
 0x15d   :  { %v1472_v55 = vrot.slane %v1238_v9, %v430_v19  ;;  %v1479_v35 = vrot.slane %v1238_v9, %v462_v61  ;;  %v1487_v19 = vrot.slane %v1238_v9, %v494_v0  ;;  %v499_v0 = vsub.f32 %v1329_v11, %v1320_v30  ;;  %s858_s10 = sshll.u32 %s1039_s4, 4  ;;  %s859_s10 = int_to_ptr.vmem [resolvable:$true] %s858_s10 }
 0x15e   :  { %v678_v37 = vpop.permute.xlu1 %677  ;;  %v566_v47 = vand.u32 2147483647, %v562_v54  ;;  %v598_v24 = vand.u32 2147483647, %v594_v3  ;;  %v658_v18 = vsub.f32 %v646_v56, %v1466_v16  ;;  %v630_v21 = vand.u32 2147483647, %v626_v36  ;;  %p999_p9 = scmp.lt.s32.totalorder %s859_s10, %s859_s10 }
 0x15f   :  { %v690_v22 = vsub.f32 %v678_v37, %v1472_v55  ;;  %v503_v54 = vand.u32 2147483647, %v499_v0  ;;  %v529_v9 = vsub.f32 %v1334_v49, %v1341_v53  ;;  %v593_v48 = vsub.f32 %v1358_v6, %v1450_v57  ;;  %s994_s11 = scalar_lea.vmem %s859_s10, 512 }
 0x160   :  { %v570_v60 = vadd.f32 %v566_v47, %v1345_v51  ;;  %v662_v44 = vand.u32 2147483647, %v658_v18  ;;  %p995_p8 = scmp.ne.s32.totalorder %s859_s10, %s994_s11  ;;  %p1000_p10 = scmp.lt.s32.totalorder %s994_s11, %s994_s11 }
 0x161   :  { %v694_v8 = vand.u32 2147483647, %v690_v22  ;;  %v560_v22 = vsub.f32 %v1347_v58, %v1443_v31 }
 0x162   :  { %v1437_v38 = vpop.permute.xlu1 %681  ;;  %v602_v23 = vadd.f32 %v598_v24, %v570_v60  ;;  %v533_v24 = vand.u32 2147483647, %v529_v9  ;;  %p1001_p11 = por %p1000_p10, %p999_p9 }
 0x164   :  { %v634_v51 = vadd.f32 %v630_v21, %v602_v23  ;;  %p1002_p12 = pnand %p1001_p11, %p995_p8 }
 0x166   :  { %v1439_v45 = vpop.permute.xlu1 %705  ;;  %v666_v41 = vadd.f32 %v662_v44, %v634_v51  ;;  %v563_v51 = vsub.f32 %v1355_v50, %v1443_v31 }
 0x168   :  { %v698_v43 = vadd.f32 %v694_v8, %v666_v41  ;;  %v567_v41 = vand.u32 2147483647, %v563_v51 }
 0x16a   :  { %v710_v10 = vpop.permute.xlu1 %709 }
 0x16b   :  { %v722_v62 = vsub.f32 %v710_v10, %v1479_v35 }
 0x16d   :  { %v726_v61 = vand.u32 2147483647, %v722_v62  ;;  %v564_v62 = vand.u32 2147483647, %v560_v22 }
 0x16e   :  { %v1452_v12 = vpop.permute.xlu1 %733 }
 0x16f   :  { %v730_v33 = vadd.f32 %v726_v61, %v698_v43 }
 0x172   :  { %v742_v52 = vpop.permute.xlu1 %741 }
 0x173   :  { %v754_v4 = vsub.f32 %v742_v52, %v1487_v19 }
 0x175   :  { %v758_v13 = vand.u32 2147483647, %v754_v4 }
 0x176   :  { %v1481_v2 = vpop.permute.xlu1 %745 }
 0x177   :  { %v762_v37 = vadd.f32 %v758_v13, %v730_v33 }
 0x17a   :  { %v1490_v7 = vpop.permute.xlu1 %769 }
 0x17b   :  { %v458_v15 = vpop.permute.xlu0 %457 }
 0x17c   :  { %v467_v28 = vsub.f32 %v458_v15, %v1304_v42 }
 0x17e   :  { %v774_v32 = vpop.permute.xlu1 %773  ;;  %v471_v1 = vand.u32 2147483647, %v467_v28  ;;  %v597_v28 = vand.u32 2147483647, %v593_v48 }
 0x17f   :  { %v786_v56 = vsub.f32 %v774_v32, %v1495_v14 }
 0x180   :  { %v475_v3 = vadd.f32 %v471_v1, %v1306_v17  ;;  %v482_v47 = vpop.permute.xlu0 %481 }
 0x181   :  { %v790_v10 = vand.u32 2147483647, %v786_v56  ;;  %v497_v36 = vsub.f32 %v482_v47, %v1320_v30 }
 0x182   :  { %v507_v11 = vadd.f32 %v503_v54, %v475_v3 }
 0x183   :  { %v794_v5 = vadd.f32 %v790_v10, %v762_v37  ;;  %v501_v42 = vand.u32 2147483647, %v497_v36  ;;  %v627_v10 = vsub.f32 %v1371_v63, %v1459_v59  ;;  %v688_v63 = vsub.f32 %v1435_v34, %v1472_v55 }
 0x184   :  { %v721_v34 = vsub.f32 %v1439_v45, %v1479_v35 }
 0x185   :  { %v798_v52 = vmul.f32 0.5, %v794_v5  ;;  %v505_v60 = vadd.f32 %v501_v42, %v1312_v25  ;;  %v510_v21 = vpop.permute.xlu0 %509  ;;  %v631_v47 = vand.u32 2147483647, %v627_v10 }
 0x186   :  { %v528_v17 = vsub.f32 %v510_v21, %v1341_v53 }
 0x187   :  { %v802_v18 = vsub.f32 1.0, %v798_v52  ;;  %v537_v23 = vadd.f32 %v533_v24, %v505_v60 }
 0x188   :  { %v532_v30 = vand.u32 2147483647, %v528_v17  ;;  %v692_v17 = vand.u32 2147483647, %v688_v63 }
 0x189   :  { %v835_v49 = vsel %vm822_vm6, %v802_v18, -1e+30  ;;  %v522_v44 = vpop.permute.xlu0 %521 }
 0x18a   :  { %839 = vst.msk [vmem:[#allocation4 + $0x10] sm:$0xff] %vm828_vm3, %v835_v49  ;;  %v536_v25 = vadd.f32 %v532_v30, %v1325_v39  ;;  %v531_v8 = vsub.f32 %v522_v44, %v1341_v53  ;;  %v624_v39 = vsub.f32 %v1366_v20, %v1459_v59  ;;  %v657_v20 = vsub.f32 %v1396_v27, %v1466_v16 }
 0x18b   :  { %v691_v49 = vsub.f32 %v1437_v38, %v1472_v55  ;;  %v752_v38 = vsub.f32 %v1452_v12, %v1487_v19  ;;  %v785_v12 = vsub.f32 %v1490_v7, %v1495_v14 }
 0x18c   :  { %v535_v58 = vand.u32 2147483647, %v531_v8  ;;  %v568_v4 = vadd.f32 %v564_v62, %v536_v25  ;;  %v628_v37 = vand.u32 2147483647, %v624_v39  ;;  %v661_v42 = vand.u32 2147483647, %v657_v20 }
 0x18d   :  { %v695_v44 = vand.u32 2147483647, %v691_v49 }
 0x18e   :  { %v539_v61 = vadd.f32 %v535_v58, %v507_v11  ;;  %v546_v43 = vpop.permute.xlu0 %545 }
 0x18f   :  { %v561_v13 = vsub.f32 %v546_v43, %v1443_v31 }
 0x190   :  { %v571_v15 = vadd.f32 %v567_v41, %v539_v61 }
 0x191   :  { %v565_v0 = vand.u32 2147483647, %v561_v13 }
 0x193   :  { %v569_v32 = vadd.f32 %v565_v0, %v537_v23  ;;  %v574_v33 = vpop.permute.xlu0 %573  ;;  %v755_v0 = vsub.f32 %v1481_v2, %v1487_v19 }
 0x194   :  { %v592_v53 = vsub.f32 %v574_v33, %v1450_v57 }
 0x195   :  { %v601_v50 = vadd.f32 %v597_v28, %v569_v32  ;;  %v759_v33 = vand.u32 2147483647, %v755_v0 }
 0x196   :  { %v596_v56 = vand.u32 2147483647, %v592_v53 }
 0x197   :  { %v586_v1 = vpop.permute.xlu0 %585 }
 0x198   :  { %v600_v6 = vadd.f32 %v596_v56, %v568_v4  ;;  %v595_v31 = vsub.f32 %v586_v1, %v1450_v57  ;;  %v725_v4 = vand.u32 2147483647, %v721_v34 }
 0x19a   :  { %v599_v54 = vand.u32 2147483647, %v595_v31  ;;  %v632_v3 = vadd.f32 %v628_v37, %v600_v6  ;;  %v789_v37 = vand.u32 2147483647, %v785_v12 }
 0x19c   :  { %v603_v9 = vadd.f32 %v599_v54, %v571_v15  ;;  %v610_v5 = vpop.permute.xlu0 %609  ;;  %v756_v15 = vand.u32 2147483647, %v752_v38 }
 0x19d   :  { %v625_v36 = vsub.f32 %v610_v5, %v1459_v59 }
 0x19e   :  { %v635_v11 = vadd.f32 %v631_v47, %v603_v9 }
 0x19f   :  { %v629_v52 = vand.u32 2147483647, %v625_v36 }
 0x1a1   :  { %v633_v24 = vadd.f32 %v629_v52, %v601_v50  ;;  %v638_v18 = vpop.permute.xlu0 %637 }
 0x1a2   :  { %v656_v57 = vsub.f32 %v638_v18, %v1466_v16 }
 0x1a3   :  { %v665_v60 = vadd.f32 %v661_v42, %v633_v24 }
 0x1a4   :  { %v660_v21 = vand.u32 2147483647, %v656_v57 }
 0x1a5   :  { %v650_v22 = vpop.permute.xlu0 %649 }
 0x1a6   :  { %v664_v27 = vadd.f32 %v660_v21, %v632_v3  ;;  %v659_v59 = vsub.f32 %v650_v22, %v1466_v16 }
 0x1a8   :  { %v663_v23 = vand.u32 2147483647, %v659_v59  ;;  %v696_v30 = vadd.f32 %v692_v17, %v664_v27 }
 0x1aa   :  { %v667_v62 = vadd.f32 %v663_v23, %v635_v11  ;;  %v674_v51 = vpop.permute.xlu0 %673 }
 0x1ab   :  { %v689_v25 = vsub.f32 %v674_v51, %v1472_v55 }
 0x1ac   :  { %v699_v8 = vadd.f32 %v695_v44, %v667_v62 }
 0x1ad   :  { %v693_v58 = vand.u32 2147483647, %v689_v25 }
 0x1af   :  { %v697_v41 = vadd.f32 %v693_v58, %v665_v60  ;;  %v702_v61 = vpop.permute.xlu0 %701 }
 0x1b0   :  { %v720_v16 = vsub.f32 %v702_v61, %v1479_v35 }
 0x1b1   :  { %v729_v43 = vadd.f32 %v725_v4, %v697_v41 }
 0x1b2   :  { %v724_v48 = vand.u32 2147483647, %v720_v16 }
 0x1b3   :  { %v714_v13 = vpop.permute.xlu0 %713 }
 0x1b4   :  { %v728_v45 = vadd.f32 %v724_v48, %v696_v30  ;;  %v723_v55 = vsub.f32 %v714_v13, %v1479_v35 }
 0x1b6   :  { %v727_v28 = vand.u32 2147483647, %v723_v55  ;;  %v760_v32 = vadd.f32 %v756_v15, %v728_v45 }
 0x1b8   :  { %v731_v39 = vadd.f32 %v727_v28, %v699_v8  ;;  %v738_v53 = vpop.permute.xlu0 %737 }
 0x1b9   :  { %v753_v50 = vsub.f32 %v738_v53, %v1487_v19 }
 0x1ba   :  { %v763_v56 = vadd.f32 %v759_v33, %v731_v39 }
 0x1bb   :  { %v757_v1 = vand.u32 2147483647, %v753_v50 }
 0x1bd   :  { %v761_v10 = vadd.f32 %v757_v1, %v729_v43  ;;  %v766_v6 = vpop.permute.xlu0 %765 }
 0x1be   :  { %v784_v2 = vsub.f32 %v766_v6, %v1495_v14 }
 0x1bf   :  { %v793_v31 = vadd.f32 %v789_v37, %v761_v10 }
 0x1c0   :  { %v788_v54 = vand.u32 2147483647, %v784_v2 }
 0x1c1   :  { %v797_v35 = vmul.f32 0.5, %v793_v31  ;;  %v778_v3 = vpop.permute.xlu0 %777 }
 0x1c2   :  { %v792_v47 = vadd.f32 %v788_v54, %v760_v32  ;;  %v787_v9 = vsub.f32 %v778_v3, %v1495_v14 }
 0x1c3   :  { %v801_v5 = vsub.f32 1.0, %v797_v35 }
 0x1c4   :  { %v796_v20 = vmul.f32 0.5, %v792_v47  ;;  %v791_v36 = vand.u32 2147483647, %v787_v9 }
 0x1c5   :  { %v834_v19 = vsel %vm821_vm2, %v801_v5, -1e+30 }
 0x1c6   :  { %838 = vst.msk [vmem:[#allocation4 + $0x8] sm:$0xff] %vm828_vm3, %v834_v19  ;;  %v800_v7 = vsub.f32 1.0, %v796_v20  ;;  %v795_v11 = vadd.f32 %v791_v36, %v763_v56 }
 0x1c8   :  { %v833_v52 = vsel %vm820_vm5, %v800_v7, -1e+30  ;;  %v799_v42 = vmul.f32 0.5, %v795_v11 }
 0x1c9   :  { %837 = vst.msk [vmem:[#allocation4] sm:$0xff] %vm828_vm3, %v833_v52 }
 0x1ca   :  { %v803_v14 = vsub.f32 1.0, %v799_v42 }
 0x1cc   :  { %v836_v40 = vsel %vm823_vm4, %v803_v14, -1e+30 }
 0x1cd   :  { %840 = vst.msk [vmem:[#allocation4 + $0x18] sm:$0xff] %vm828_vm3, %v836_v40 }
 0x1ce   :  { %1005 = shalt.err (!%p1002_p12)
}
 0x1cf   :  { %s1006_s13 = scalar_lea.hbm %s1581_s5, 512 }
 0x1d0   :  { %p1007_p13 = scmp.ne.s32.totalorder %s1581_s5, %s1006_s13  ;;  %p1010_p0 = scmp.lt.u32.totalorder %s1006_s13, %s1581_s5 }
 0x1d2   :  { %p1012_p1 = pnand %p1010_p0, %p1007_p13 }
 0x1d4   :  { %1015 = shalt.err (!%p1012_p1)
}
 0x1d5   :  { %864 = dma.vmem_to_hbm [thread:$0]  %s859_s10, 512, %s1581_s5, [#allocation5], %s1037_s6, %s1037_s6, %s1038_s7  }
 0x1d6   :  { %1016 = dma.done.wait [#allocation3], 512  }
 0x1d7   :  { %1017 = vsyncadd [#allocation3], 4294966784 }
 0x1d8   :  { %1018 = dma.done.wait [#allocation5], 512  }
 0x1d9   :  { %1019 = vsyncadd [#allocation5], 4294966784 }
 0x1da   :  { %871 = vsyncpa [#allocation3], 1 }
 0x1db   :  { %872 = vsyncpa [#allocation5], 1 }

</bundles_post_ra>
